<compile_context>
chip_gen: v7x
topology: tpu7x:2x2x1
jax: 0.10.0
libtpu: 0.0.40
codegen_flags: <defaults>
</compile_context>

<pallas_src>
import functools
import math

import jax
import jax.numpy as jnp
import numpy as np
from jax.experimental import pallas as pl
from jax.experimental.pallas import tpu as pltpu

# ----------------------------------------------------------------------------------
# Synthetic config (consistent with CausalSelfAttention.__init__ shape arithmetic)
# ----------------------------------------------------------------------------------
HIDDEN_SIZE = 32                          # config.hidden_size
NUM_HEADS = 4                             # config.num_attention_heads
NUM_QUERY_GROUPS = 4                      # config.num_query_groups (== heads -> MHA)
KV_CHANNELS = HIDDEN_SIZE // NUM_HEADS    # 8 ; hidden_size_per_attention_head
HEAD_DIM = 2 * KV_CHANNELS                # 16; the "doubled" head dim the forward uses
SEQ = 8
BATCH = 2
# add_bias_linear = False, use_shared_attention_lora = False, dropout = 0.0


# ----------------------------------------------------------------------------------
# Host-side one-time weight prep: permute linear_qkv columns so Q-heads, K, V form
# contiguous slabs [Wq | Wk | Wv] (lane-aligned slabs at real sizes where hd % 128 == 0).
# ----------------------------------------------------------------------------------
def permute_qkv_columns(w_qkv, *, nh=NUM_HEADS, ng=NUM_QUERY_GROUPS, hd=HEAD_DIM):
    qpg = nh // ng
    gsz = (qpg + 2) * hd
    q_cols, k_cols, v_cols = [], [], []
    for g in range(ng):
        base = g * gsz
        q_cols += list(range(base, base + qpg * hd))
        k_cols += list(range(base + qpg * hd, base + (qpg + 1) * hd))
        v_cols += list(range(base + (qpg + 1) * hd, base + (qpg + 2) * hd))
    perm = np.asarray(q_cols + k_cols + v_cols)
    return jnp.asarray(np.asarray(w_qkv)[:, perm])


# ----------------------------------------------------------------------------------
# Fused kernel: per-batch QKV projection + causal SDPA over all heads + output proj
# ----------------------------------------------------------------------------------
def _attn_kernel(x_ref, wqkv_ref, wproj_ref, o_ref, y_ref, *,
                 nh, ng, hd, scale, approx_recip):
    cdt = wqkv_ref.dtype                       # MXU operand dtype (fp32 or bf16)
    qpg = nh // ng
    S = x_ref.shape[1]

    x = x_ref[0].astype(cdt)                   # [S, 2H]

    # linear_qkv: one MXU matmul; weight columns pre-permuted to [Wq | Wk | Wv].
    qkv = jnp.dot(x, wqkv_ref[...], preferred_element_type=jnp.float32)   # [S, 6H] f32
    q = qkv[:, : nh * hd]                      # [S, nh*hd]
    k = qkv[:, nh * hd: (nh + ng) * hd]        # [S, ng*hd]
    v = qkv[:, (nh + ng) * hd:]                # [S, ng*hd]

    # Causal additive bias from 2-D iota (no O(S^2) HBM DMA); hoisted out of the
    # head loop.  Diagonal stays unmasked, so no all-masked rows / NaNs.
    row = jax.lax.broadcasted_iota(jnp.int32, (S, S), 0)
    col = jax.lax.broadcasted_iota(jnp.int32, (S, S), 1)
    bias = jnp.where(col <= row, jnp.float32(0.0), jnp.float32(-jnp.inf))  # [S, S]

    for h in range(nh):                        # unrolled at trace time (nh is small)
        g = h // qpg
        q_h = q[:, h * hd:(h + 1) * hd].astype(cdt)
        k_h = k[:, g * hd:(g + 1) * hd].astype(cdt)
        v_h = v[:, g * hd:(g + 1) * hd].astype(cdt)

        # Contract the head dim directly -- no explicit k_h.T relayout.
        s = jax.lax.dot_general(q_h, k_h, (((1,), (1,)), ((), ())),
                                preferred_element_type=jnp.float32)        # [S, S]
        s = s * scale + bias

        # Softmax along keys in fp32 (matches F.softmax(..., dtype=torch.float32)).
        s = s - jnp.max(s, axis=-1, keepdims=True)
        p = jnp.exp(s)
        denom = jnp.sum(p, axis=-1, keepdims=True)

        # Normalize AFTER the PV matmul: O(S*hd) multiplies instead of O(S*S);
        # approx=True rides the EUP slot when tolerances allow (bf16 path).
        o_h = jnp.dot(p.astype(cdt), v_h, preferred_element_type=jnp.float32)
        o_h = o_h * pl.reciprocal(denom, approx=approx_recip)

        # Sliced store into the proj-input scratch (no lane-concat of head outputs).
        y_ref[:, h * hd:(h + 1) * hd] = o_h

    # linear_proj on the assembled [S, nh*hd] == [S, 2H] slab.
    out = jnp.dot(y_ref[...].astype(cdt), wproj_ref[...],
                  preferred_element_type=jnp.float32)                      # [S, H]
    o_ref[0] = out.astype(o_ref.dtype)


# ----------------------------------------------------------------------------------
# Wrapper: [S, B, 2*hidden] -> [S, B, hidden]
# ----------------------------------------------------------------------------------
@functools.partial(jax.jit, static_argnames=("matmul_dtype", "approx_recip"))
def causal_self_attention_forward(hidden_states, w_qkv_p, w_proj, *,
                                  matmul_dtype=jnp.float32, approx_recip=False):
    S, B, two_h = hidden_states.shape
    H = two_h // 2
    nh, ng, kvc, hd = NUM_HEADS, NUM_QUERY_GROUPS, KV_CHANNELS, HEAD_DIM
    assert two_h == 2 * HIDDEN_SIZE and nh * hd == two_h

    scale = 1.0 / math.sqrt(kvc)                   # dpa.scale_factor buffer
    x = jnp.transpose(hidden_states, (1, 0, 2))    # [B, S, 2H]  (lane-dense per-batch blocks)
    wqkv = w_qkv_p.astype(matmul_dtype)            # bf16 halves the weight DMA on v5e/v6e
    wproj = w_proj.astype(matmul_dtype)

    kern = functools.partial(_attn_kernel, nh=nh, ng=ng, hd=hd,
                             scale=scale, approx_recip=approx_recip)

    flops = B * (2 * S * two_h * 6 * H             # linear_qkv
                 + nh * 4 * S * S * hd             # scores + PV per head
                 + 2 * S * two_h * H)              # linear_proj
    bytes_accessed = 4 * (B * S * two_h + two_h * 6 * H + two_h * H + B * S * H)

    out = pl.pallas_call(
        kern,
        grid=(B,),
        out_shape=jax.ShapeDtypeStruct((B, S, H), hidden_states.dtype),
        in_specs=[
            pl.BlockSpec((1, S, two_h), lambda b: (b, 0, 0)),      # per-batch activations
            pl.BlockSpec((two_h, 6 * H), lambda b: (0, 0)),        # resident across grid
            pl.BlockSpec((two_h, H), lambda b: (0, 0)),            # resident across grid
        ],
        out_specs=pl.BlockSpec((1, S, H), lambda b: (b, 0, 0)),
        scratch_shapes=[pltpu.VMEM((S, nh * hd), jnp.float32)],    # head-output slab
        compiler_params=pltpu.CompilerParams(
            dimension_semantics=("parallel",)),                    # v7x: 2 TCs split batch
        cost_estimate=pl.CostEstimate(flops=flops,
                                      transcendentals=B * nh * S * S,
                                      bytes_accessed=bytes_accessed),
    )(x, wqkv, wproj)

    return jnp.transpose(out, (1, 0, 2))           # back to [S, B, H]


# ----------------------------------------------------------------------------------
# Pure-JAX reference (same math, original unpermuted weights) for correctness checks
# ----------------------------------------------------------------------------------
def reference_forward(hidden_states, w_qkv, w_proj):
    S, B, _ = hidden_states.shape
    H, nh, ng, kvc, hd = HIDDEN_SIZE, NUM_HEADS, NUM_QUERY_GROUPS, KV_CHANNELS, HEAD_DIM
    qpg = nh // ng
    qkv = hidden_states.reshape(S * B, 2 * H) @ w_qkv
    qkv = qkv.reshape(S, B, ng, (qpg + 2) * hd)
    q_sz = qpg * hd
    q = qkv[..., :q_sz].reshape(S, B, nh, hd)
    k = qkv[..., q_sz: q_sz + hd]
    v = qkv[..., q_sz + hd:]
    scale = 1.0 / math.sqrt(kvc)
    s = jnp.einsum("lbhd,mbhd->bhlm", q, k) * scale
    mask = jnp.triu(jnp.ones((S, S), dtype=bool), k=1)
    s = jnp.where(mask[None, None], -jnp.inf, s)
    p = jax.nn.softmax(s.astype(jnp.float32), axis=-1)
    y = jnp.einsum("bhlm,mbhd->lbhd", p, v)
    out = y.reshape(S * B, nh * hd) @ w_proj
    return out.reshape(S, B, H)


# ----------------------------------------------------------------------------------
if __name__ == "__main__":
    key = jax.random.PRNGKey(0)
    k_x, k_qkv, k_proj = jax.random.split(key, 3)

    hidden_states = jax.random.normal(k_x, (SEQ, BATCH, 2 * HIDDEN_SIZE), jnp.float32)
    # weights stored pre-transposed: [in_features, out_features]
    w_qkv = 0.02 * jax.random.normal(k_qkv, (2 * HIDDEN_SIZE, 6 * HIDDEN_SIZE), jnp.float32)
    w_proj = 0.02 * jax.random.normal(k_proj, (2 * HIDDEN_SIZE, HIDDEN_SIZE), jnp.float32)

    w_qkv_p = permute_qkv_columns(w_qkv)           # one-time host prep

    ref = jax.block_until_ready(reference_forward(hidden_states, w_qkv, w_proj))

    # fp32 path (matches the PyTorch module's fp32 semantics; strict tolerance).
    out = jax.block_until_ready(
        causal_self_attention_forward(hidden_states, w_qkv_p, w_proj))
    np.testing.assert_allclose(np.asarray(out), np.asarray(ref), rtol=1e-5, atol=1e-5)

    # bf16 MXU-operand path (v5e/v6e perf variant); softmax/accumulation stay fp32.
    out_bf16 = jax.block_until_ready(
        causal_self_attention_forward(hidden_states, w_qkv_p, w_proj,
                                      matmul_dtype=jnp.bfloat16, approx_recip=True))
    np.testing.assert_allclose(np.asarray(out_bf16), np.asarray(ref), rtol=2e-2, atol=2e-2)

    assert out.shape == (SEQ, BATCH, HIDDEN_SIZE)
    print("KERNEL_OK")
</pallas_src>

<mosaic_0001>
module attributes {stable_mosaic.version = 11 : i64} {
  func.func @_attn_kernel(%arg0: i32, %arg1: memref<1x8x64xf32, #tpu.memory_space<vmem>>, %arg2: memref<64x192xf32, #tpu.memory_space<vmem>>, %arg3: memref<64x32xf32, #tpu.memory_space<vmem>>, %arg4: memref<1x8x32xf32, #tpu.memory_space<vmem>>, %arg5: memref<8x64xf32, #tpu.memory_space<vmem>>) attributes {dimension_semantics = [#tpu.dimension_semantics<parallel>], iteration_bounds = array<i64: 2>, scalar_prefetch = 0 : i64, scratch_operands = 1 : i64, tpu.core_type = #tpu.core_type<tc>, window_params = [{transform_indices = @transform_0, window_bounds = array<i64: 1, 8, 64>}, {pipeline_mode = #tpu.pipeline_mode<synchronous>, transform_indices = @transform_1, window_bounds = array<i64: 64, 192>}, {pipeline_mode = #tpu.pipeline_mode<synchronous>, transform_indices = @transform_2, window_bounds = array<i64: 64, 32>}, {transform_indices = @transform_3, window_bounds = array<i64: 1, 8, 32>}]} {
    %c0 = arith.constant 0 : index
    %c0_0 = arith.constant 0 : index
    %c0_1 = arith.constant 0 : index
    %0 = vector.load %arg1[%c0, %c0_0, %c0_1] : memref<1x8x64xf32, #tpu.memory_space<vmem>>, vector<1x8x64xf32>
    %1 = vector.shape_cast %0 : vector<1x8x64xf32> to vector<8x64xf32>
    %c0_2 = arith.constant 0 : index
    %c0_3 = arith.constant 0 : index
    %2 = vector.load %arg2[%c0_2, %c0_3] : memref<64x192xf32, #tpu.memory_space<vmem>>, vector<64x192xf32>
    %cst = arith.constant dense<0.000000e+00> : vector<8x192xf32>
    %3 = tpu.matmul %1, %2, %cst {dimension_numbers = #tpu.dot_dimension_numbers<[1], [0], [0], [1], [0, 0, 1, 1], [], []>} : vector<8x64xf32>, vector<64x192xf32>, vector<8x192xf32> -> vector<8x192xf32>
    %4 = vector.extract_strided_slice %3 {offsets = [0, 0], sizes = [8, 64], strides = [1, 1]} : vector<8x192xf32> to vector<8x64xf32>
    %5 = vector.extract_strided_slice %3 {offsets = [0, 64], sizes = [8, 64], strides = [1, 1]} : vector<8x192xf32> to vector<8x64xf32>
    %6 = vector.extract_strided_slice %3 {offsets = [0, 128], sizes = [8, 64], strides = [1, 1]} : vector<8x192xf32> to vector<8x64xf32>
    %7 = tpu.iota {dimensions = array<i32: 0>} : vector<8x8xi32>
    %8 = tpu.iota {dimensions = array<i32: 1>} : vector<8x8xi32>
    %9 = arith.cmpi sle, %8, %7 : vector<8x8xi32>
    %cst_4 = arith.constant 0.000000e+00 : f32
    %cst_5 = arith.constant 0xFF800000 : f32
    %10 = vector.broadcast %cst_4 : f32 to vector<8x8xf32>
    %11 = vector.broadcast %cst_5 : f32 to vector<8x8xf32>
    %12 = arith.select %9, %10, %11 : vector<8x8xi1>, vector<8x8xf32>
    %13 = vector.extract_strided_slice %4 {offsets = [0, 0], sizes = [8, 16], strides = [1, 1]} : vector<8x64xf32> to vector<8x16xf32>
    %14 = vector.extract_strided_slice %5 {offsets = [0, 0], sizes = [8, 16], strides = [1, 1]} : vector<8x64xf32> to vector<8x16xf32>
    %15 = vector.extract_strided_slice %6 {offsets = [0, 0], sizes = [8, 16], strides = [1, 1]} : vector<8x64xf32> to vector<8x16xf32>
    %cst_6 = arith.constant dense<0.000000e+00> : vector<8x8xf32>
    %16 = tpu.matmul %13, %14, %cst_6 {dimension_numbers = #tpu.dot_dimension_numbers<[1], [1], [0], [0], [0, 0, 1, 0], [], []>} : vector<8x16xf32>, vector<8x16xf32>, vector<8x8xf32> -> vector<8x8xf32>
    %cst_7 = arith.constant 0.353553385 : f32
    %17 = vector.broadcast %cst_7 : f32 to vector<8x8xf32>
    %18 = arith.mulf %16, %17 : vector<8x8xf32>
    %19 = arith.addf %18, %12 : vector<8x8xf32>
    %cst_8 = arith.constant dense<0xFF800000> : vector<8xf32>
    %20 = vector.multi_reduction <maximumf>, %19, %cst_8 [1] : vector<8x8xf32> to vector<8xf32>
    %21 = vector.shape_cast %20 : vector<8xf32> to vector<8x1xf32>
    %22 = vector.broadcast %21 : vector<8x1xf32> to vector<8x8xf32>
    %23 = arith.subf %19, %22 : vector<8x8xf32>
    %24 = math.exp %23 : vector<8x8xf32>
    %cst_9 = arith.constant dense<0.000000e+00> : vector<8xf32>
    %25 = vector.multi_reduction <add>, %24, %cst_9 [1] : vector<8x8xf32> to vector<8xf32>
    %26 = vector.shape_cast %25 : vector<8xf32> to vector<8x1xf32>
    %cst_10 = arith.constant dense<0.000000e+00> : vector<8x16xf32>
    %27 = tpu.matmul %24, %15, %cst_10 {dimension_numbers = #tpu.dot_dimension_numbers<[1], [0], [0], [1], [0, 0, 1, 1], [], []>} : vector<8x8xf32>, vector<8x16xf32>, vector<8x16xf32> -> vector<8x16xf32>
    %28 = tpu.reciprocal %26 : vector<8x1xf32> -> vector<8x1xf32>
    %29 = vector.broadcast %28 : vector<8x1xf32> to vector<8x16xf32>
    %30 = arith.mulf %27, %29 : vector<8x16xf32>
    %c0_11 = arith.constant 0 : index
    %c0_12 = arith.constant 0 : index
    %31 = vector.load %arg5[%c0_11, %c0_12] : memref<8x64xf32, #tpu.memory_space<vmem>>, vector<8x16xf32>
    tpu.vector_store %arg5[%c0_11, %c0_12], %30 {strides = array<i32>} : memref<8x64xf32, #tpu.memory_space<vmem>>, vector<8x16xf32>,
    %32 = vector.extract_strided_slice %4 {offsets = [0, 16], sizes = [8, 16], strides = [1, 1]} : vector<8x64xf32> to vector<8x16xf32>
    %33 = vector.extract_strided_slice %5 {offsets = [0, 16], sizes = [8, 16], strides = [1, 1]} : vector<8x64xf32> to vector<8x16xf32>
    %34 = vector.extract_strided_slice %6 {offsets = [0, 16], sizes = [8, 16], strides = [1, 1]} : vector<8x64xf32> to vector<8x16xf32>
    %cst_13 = arith.constant dense<0.000000e+00> : vector<8x8xf32>
    %35 = tpu.matmul %32, %33, %cst_13 {dimension_numbers = #tpu.dot_dimension_numbers<[1], [1], [0], [0], [0, 0, 1, 0], [], []>} : vector<8x16xf32>, vector<8x16xf32>, vector<8x8xf32> -> vector<8x8xf32>
    %cst_14 = arith.constant 0.353553385 : f32
    %36 = vector.broadcast %cst_14 : f32 to vector<8x8xf32>
    %37 = arith.mulf %35, %36 : vector<8x8xf32>
    %38 = arith.addf %37, %12 : vector<8x8xf32>
    %cst_15 = arith.constant dense<0xFF800000> : vector<8xf32>
    %39 = vector.multi_reduction <maximumf>, %38, %cst_15 [1] : vector<8x8xf32> to vector<8xf32>
    %40 = vector.shape_cast %39 : vector<8xf32> to vector<8x1xf32>
    %41 = vector.broadcast %40 : vector<8x1xf32> to vector<8x8xf32>
    %42 = arith.subf %38, %41 : vector<8x8xf32>
    %43 = math.exp %42 : vector<8x8xf32>
    %cst_16 = arith.constant dense<0.000000e+00> : vector<8xf32>
    %44 = vector.multi_reduction <add>, %43, %cst_16 [1] : vector<8x8xf32> to vector<8xf32>
    %45 = vector.shape_cast %44 : vector<8xf32> to vector<8x1xf32>
    %cst_17 = arith.constant dense<0.000000e+00> : vector<8x16xf32>
    %46 = tpu.matmul %43, %34, %cst_17 {dimension_numbers = #tpu.dot_dimension_numbers<[1], [0], [0], [1], [0, 0, 1, 1], [], []>} : vector<8x8xf32>, vector<8x16xf32>, vector<8x16xf32> -> vector<8x16xf32>
    %47 = tpu.reciprocal %45 : vector<8x1xf32> -> vector<8x1xf32>
    %48 = vector.broadcast %47 : vector<8x1xf32> to vector<8x16xf32>
    %49 = arith.mulf %46, %48 : vector<8x16xf32>
    %c0_18 = arith.constant 0 : index
    %c16 = arith.constant 16 : index
    %50 = vector.load %arg5[%c0_18, %c16] : memref<8x64xf32, #tpu.memory_space<vmem>>, vector<8x16xf32>
    tpu.vector_store %arg5[%c0_18, %c16], %49 {strides = array<i32>} : memref<8x64xf32, #tpu.memory_space<vmem>>, vector<8x16xf32>,
    %51 = vector.extract_strided_slice %4 {offsets = [0, 32], sizes = [8, 16], strides = [1, 1]} : vector<8x64xf32> to vector<8x16xf32>
    %52 = vector.extract_strided_slice %5 {offsets = [0, 32], sizes = [8, 16], strides = [1, 1]} : vector<8x64xf32> to vector<8x16xf32>
    %53 = vector.extract_strided_slice %6 {offsets = [0, 32], sizes = [8, 16], strides = [1, 1]} : vector<8x64xf32> to vector<8x16xf32>
    %cst_19 = arith.constant dense<0.000000e+00> : vector<8x8xf32>
    %54 = tpu.matmul %51, %52, %cst_19 {dimension_numbers = #tpu.dot_dimension_numbers<[1], [1], [0], [0], [0, 0, 1, 0], [], []>} : vector<8x16xf32>, vector<8x16xf32>, vector<8x8xf32> -> vector<8x8xf32>
    %cst_20 = arith.constant 0.353553385 : f32
    %55 = vector.broadcast %cst_20 : f32 to vector<8x8xf32>
    %56 = arith.mulf %54, %55 : vector<8x8xf32>
    %57 = arith.addf %56, %12 : vector<8x8xf32>
    %cst_21 = arith.constant dense<0xFF800000> : vector<8xf32>
    %58 = vector.multi_reduction <maximumf>, %57, %cst_21 [1] : vector<8x8xf32> to vector<8xf32>
    %59 = vector.shape_cast %58 : vector<8xf32> to vector<8x1xf32>
    %60 = vector.broadcast %59 : vector<8x1xf32> to vector<8x8xf32>
    %61 = arith.subf %57, %60 : vector<8x8xf32>
    %62 = math.exp %61 : vector<8x8xf32>
    %cst_22 = arith.constant dense<0.000000e+00> : vector<8xf32>
    %63 = vector.multi_reduction <add>, %62, %cst_22 [1] : vector<8x8xf32> to vector<8xf32>
    %64 = vector.shape_cast %63 : vector<8xf32> to vector<8x1xf32>
    %cst_23 = arith.constant dense<0.000000e+00> : vector<8x16xf32>
    %65 = tpu.matmul %62, %53, %cst_23 {dimension_numbers = #tpu.dot_dimension_numbers<[1], [0], [0], [1], [0, 0, 1, 1], [], []>} : vector<8x8xf32>, vector<8x16xf32>, vector<8x16xf32> -> vector<8x16xf32>
    %66 = tpu.reciprocal %64 : vector<8x1xf32> -> vector<8x1xf32>
    %67 = vector.broadcast %66 : vector<8x1xf32> to vector<8x16xf32>
    %68 = arith.mulf %65, %67 : vector<8x16xf32>
    %c0_24 = arith.constant 0 : index
    %c32 = arith.constant 32 : index
    %69 = vector.load %arg5[%c0_24, %c32] : memref<8x64xf32, #tpu.memory_space<vmem>>, vector<8x16xf32>
    tpu.vector_store %arg5[%c0_24, %c32], %68 {strides = array<i32>} : memref<8x64xf32, #tpu.memory_space<vmem>>, vector<8x16xf32>,
    %70 = vector.extract_strided_slice %4 {offsets = [0, 48], sizes = [8, 16], strides = [1, 1]} : vector<8x64xf32> to vector<8x16xf32>
    %71 = vector.extract_strided_slice %5 {offsets = [0, 48], sizes = [8, 16], strides = [1, 1]} : vector<8x64xf32> to vector<8x16xf32>
    %72 = vector.extract_strided_slice %6 {offsets = [0, 48], sizes = [8, 16], strides = [1, 1]} : vector<8x64xf32> to vector<8x16xf32>
    %cst_25 = arith.constant dense<0.000000e+00> : vector<8x8xf32>
    %73 = tpu.matmul %70, %71, %cst_25 {dimension_numbers = #tpu.dot_dimension_numbers<[1], [1], [0], [0], [0, 0, 1, 0], [], []>} : vector<8x16xf32>, vector<8x16xf32>, vector<8x8xf32> -> vector<8x8xf32>
    %cst_26 = arith.constant 0.353553385 : f32
    %74 = vector.broadcast %cst_26 : f32 to vector<8x8xf32>
    %75 = arith.mulf %73, %74 : vector<8x8xf32>
    %76 = arith.addf %75, %12 : vector<8x8xf32>
    %cst_27 = arith.constant dense<0xFF800000> : vector<8xf32>
    %77 = vector.multi_reduction <maximumf>, %76, %cst_27 [1] : vector<8x8xf32> to vector<8xf32>
    %78 = vector.shape_cast %77 : vector<8xf32> to vector<8x1xf32>
    %79 = vector.broadcast %78 : vector<8x1xf32> to vector<8x8xf32>
    %80 = arith.subf %76, %79 : vector<8x8xf32>
    %81 = math.exp %80 : vector<8x8xf32>
    %cst_28 = arith.constant dense<0.000000e+00> : vector<8xf32>
    %82 = vector.multi_reduction <add>, %81, %cst_28 [1] : vector<8x8xf32> to vector<8xf32>
    %83 = vector.shape_cast %82 : vector<8xf32> to vector<8x1xf32>
    %cst_29 = arith.constant dense<0.000000e+00> : vector<8x16xf32>
    %84 = tpu.matmul %81, %72, %cst_29 {dimension_numbers = #tpu.dot_dimension_numbers<[1], [0], [0], [1], [0, 0, 1, 1], [], []>} : vector<8x8xf32>, vector<8x16xf32>, vector<8x16xf32> -> vector<8x16xf32>
    %85 = tpu.reciprocal %83 : vector<8x1xf32> -> vector<8x1xf32>
    %86 = vector.broadcast %85 : vector<8x1xf32> to vector<8x16xf32>
    %87 = arith.mulf %84, %86 : vector<8x16xf32>
    %c0_30 = arith.constant 0 : index
    %c48 = arith.constant 48 : index
    %88 = vector.load %arg5[%c0_30, %c48] : memref<8x64xf32, #tpu.memory_space<vmem>>, vector<8x16xf32>
    tpu.vector_store %arg5[%c0_30, %c48], %87 {strides = array<i32>} : memref<8x64xf32, #tpu.memory_space<vmem>>, vector<8x16xf32>,
    %c0_31 = arith.constant 0 : index
    %c0_32 = arith.constant 0 : index
    %89 = vector.load %arg5[%c0_31, %c0_32] : memref<8x64xf32, #tpu.memory_space<vmem>>, vector<8x64xf32>
    %c0_33 = arith.constant 0 : index
    %c0_34 = arith.constant 0 : index
    %90 = vector.load %arg3[%c0_33, %c0_34] : memref<64x32xf32, #tpu.memory_space<vmem>>, vector<64x32xf32>
    %cst_35 = arith.constant dense<0.000000e+00> : vector<8x32xf32>
    %91 = tpu.matmul %89, %90, %cst_35 {dimension_numbers = #tpu.dot_dimension_numbers<[1], [0], [0], [1], [0, 0, 1, 1], [], []>} : vector<8x64xf32>, vector<64x32xf32>, vector<8x32xf32> -> vector<8x32xf32>
    %c0_36 = arith.constant 0 : index
    %c0_37 = arith.constant 0 : index
    %c0_38 = arith.constant 0 : index
    %92 = vector.load %arg4[%c0_36, %c0_37, %c0_38] : memref<1x8x32xf32, #tpu.memory_space<vmem>>, vector<1x8x32xf32>
    %93 = vector.shape_cast %92 : vector<1x8x32xf32> to vector<8x32xf32>
    %94 = vector.shape_cast %91 : vector<8x32xf32> to vector<1x8x32xf32>
    tpu.vector_store %arg4[%c0_36, %c0_37, %c0_38], %94 {strides = array<i32>} : memref<1x8x32xf32, #tpu.memory_space<vmem>>, vector<1x8x32xf32>,
    return
  }
  func.func @transform_0(%arg0: i32) -> (i32, i32, i32) {
    %c0_i32 = arith.constant 0 : i32
    %c0_i32_0 = arith.constant 0 : i32
    %c0_i32_1 = arith.constant 0 : i32
    return %arg0, %c0_i32, %c0_i32_0 : i32, i32, i32
  }
  func.func @transform_1(%arg0: i32) -> (i32, i32) {
    %c0_i32 = arith.constant 0 : i32
    %c0_i32_0 = arith.constant 0 : i32
    %c0_i32_1 = arith.constant 0 : i32
    return %c0_i32, %c0_i32_0 : i32, i32
  }
  func.func @transform_2(%arg0: i32) -> (i32, i32) {
    %c0_i32 = arith.constant 0 : i32
    %c0_i32_0 = arith.constant 0 : i32
    %c0_i32_1 = arith.constant 0 : i32
    return %c0_i32, %c0_i32_0 : i32, i32
  }
  func.func @transform_3(%arg0: i32) -> (i32, i32, i32) {
    %c0_i32 = arith.constant 0 : i32
    %c0_i32_0 = arith.constant 0 : i32
    %c0_i32_1 = arith.constant 0 : i32
    return %arg0, %c0_i32, %c0_i32_0 : i32, i32, i32
  }
}

</mosaic_0001>

<bundles_post_ra>
// kernel: causal_self_attention_forward.1
= control target key start
LH: loop header
LB: loop body
LE: loop exit
PB: predicated region body
PF: predicated region fallthrough
CT: control target
= control target key end

     0   :  { %s1296_s12 = smov 0   ;;  %s1471_s0 = inlined_call_operand.vmem [shape: f32[2,8,64], index: 0, kind: input, shape index: {}]   ;;  %s1472_s1 = inlined_call_operand.vmem [shape: f32[64,192], index: 1, kind: input, shape index: {}]   ;;  %s1473_s2 = inlined_call_operand.vmem [shape: f32[64,32], index: 2, kind: input, shape index: {}]   ;;  %s1474_s3 = inlined_call_operand.vmem [shape: f32[2,8,32], index: 3, kind: output, shape index: {}]  }
   0x1 LB: > { %s1087_s13 = sadd.s32 4294967295, %s1263_s12   ;;  %p1091_p0 = scmp.ge.s32.totalorder %s1263_s12, 1  ;;  %s1263_s12 = sphi %s1296_s12, %s13_s12  }
   0x2   : > { %p136_p1 = scmp.lt.s32.totalorder %s1263_s12, 3 }
   0x4   : > { %p137_p2 = pnand %p1091_p0, %p136_p1 }
   0x5   : > { %v168_v0 = vld [vmem:[%s1472_s1 + $0x8] sm:$0xff] (!%p137_p2)  ;;  %v170_v1 = vld [vmem:[%s1472_s1 + $0x18] sm:$0xff] (!%p137_p2)  ;;  %v167_v2 = vld [vmem:[%s1472_s1] sm:$0xff] (!%p137_p2)  ;;  %v1265_v7 = vmov (!%p137_p2), 0.0   ;;  %p158_p3 = scmp.lt.s32.totalorder (!%p137_p2), %s1087_s13, 1  ;;  %vm183_vm0 = vcmask (!%p137_p2), 523264   ;;  %v258_v29 = vlaneseq (!%p137_p2) }
   0x6   : > { %140 = sbr.rel (%p137_p2) target bundleno = 2412 (0x96c), region = 32  ;;  %v1194_v3 = vpack.c.bf16 (!%p137_p2), %v170_v1, %v168_v0  ;;  %v169_v4 = vld [vmem:[%s1472_s1 + $0x10] sm:$0xff] (!%p137_p2)  ;;  %v172_v5 = vld [vmem:[%s1472_s1 + $0x28] sm:$0xff] (!%p137_p2)  ;;  %v174_v6 = vld [vmem:[%s1472_s1 + $0x38] sm:$0xff] (!%p137_p2)  ;;  %251 = vmatprep.mubr.f32.mxu0 (!%p137_p2), %v1265_v7  ;;  %1135 = vmatprep.subr.mxu1 (!%p137_p2), %v1265_v7  ;;  %vm1266_vm1 = vmmov (!%p137_p2), 0   ;;  %s1267_s25 = smov (!%p137_p2), 48  }
   0x7   : > { %v1196_v8 = vpack.c.bf16 (!%p137_p2), %v169_v4, %v167_v2  ;;  %v1198_v9 = vpack.c.bf16 (!%p137_p2), %v174_v6, %v172_v5  ;;  %v171_v10 = vld [vmem:[%s1472_s1 + $0x20] sm:$0xff] (!%p137_p2)  ;;  %v173_v11 = vld [vmem:[%s1472_s1 + $0x30] sm:$0xff] (!%p137_p2)  ;;  %v176_v12 = vld [vmem:[%s1472_s1 + $0x48] sm:$0xff] (!%p137_p2)  ;;  %1137 = vmatprep.mubr.msk.f32.mxu1 (!%p137_p2), %vm1266_vm1, %v1265_v7  ;;  %s1268_s26 = smov (!%p137_p2), 64   ;;  %s1269_s27 = smov (!%p137_p2), 112   ;;  %vm267_vm2 = vcmask (!%p137_p2), 130048  }
   0x8   : > { %1195 = vmatprep.subr.bf16.mxu0 (!%p137_p2), %v1194_v3  ;;  %v178_v13 = vld [vmem:[%s1472_s1 + $0x58] sm:$0xff] (!%p137_p2)  ;;  %v1200_v14 = vpack.c.bf16 (!%p137_p2), %v173_v11, %v171_v10  ;;  %v175_v16 = vld [vmem:[%s1472_s1 + $0x40] sm:$0xff] (!%p137_p2)  ;;  %v177_v17 = vld [vmem:[%s1472_s1 + $0x50] sm:$0xff] (!%p137_p2)  ;;  %v259_v30 = vshrl.u32 (!%p137_p2), %v258_v29, 7  ;;  %v261_v31 = vand.u32 (!%p137_p2), 127, %v258_v29  ;;  %v1270_v33 = vmov (!%p137_p2), -inf  }
   0x9   : > { %1197 = vmatpush1.bf16.msra.mxu0 (!%p137_p2), %v1196_v8  ;;  %v1202_v15 = vpack.c.bf16 (!%p137_p2), %v178_v13, %v176_v12  ;;  %v180_v18 = vld [vmem:[%s1472_s1 + $0x68] sm:$0xff] (!%p137_p2)  ;;  %v182_v19 = vld [vmem:[%s1472_s1 + $0x78] sm:$0xff] (!%p137_p2)  ;;  %v1204_v20 = vpack.c.bf16 (!%p137_p2), %v177_v17, %v175_v16  ;;  %v179_v22 = vld [vmem:[%s1472_s1 + $0x60] sm:$0xff] (!%p137_p2)  ;;  %vm344_vm4 = vcmask (!%p137_p2), 64512   ;;  %s1271_s28 = smov (!%p137_p2), 96   ;;  %s1272_s29 = smov (!%p137_p2), 32  }
   0xa   : > { %1199 = vmatprep.subr.bf16.mxu0 (!%p137_p2), %v1198_v9  ;;  %v1206_v21 = vpack.c.bf16 (!%p137_p2), %v182_v19, %v180_v18  ;;  %v181_v23 = vld [vmem:[%s1472_s1 + $0x70] sm:$0xff] (!%p137_p2)  ;;  %vm262_vm3 = vcmp.le.s32.totalorder (!%p137_p2), %v261_v31, %v259_v30  ;;  %s1273_s30 = smov (!%p137_p2), 16   ;;  %s1274_s4 = smov (!%p137_p2), 80   ;;  %vm602_vm5 = vcmask (!%p137_p2), 261248   ;;  %vm775_vm6 = vcmask (!%p137_p2), 392448  }
   0xb   : > { %v1208_v24 = vpack.c.bf16 (!%p137_p2), %v181_v23, %v179_v22  ;;  %v1381_v34 = vsel (!%p137_p2), %vm262_vm3, 0.0, %v1270_v33  ;;  %vm948_vm7 = vcmask (!%p137_p2), 523648   ;;  %vm1032_vm8 = vcmask (!%p137_p2), 261120  }
   0xd   : > { %s1476_s13 = smov (!%p158_p3, %s1087_s13), 1  ;;  %1201 = vmatpush1.bf16.msra.mxu0 %v1200_v14 }
   0xe   : > { %1203 = vmatprep.subr.bf16.mxu0 %v1202_v15  ;;  %s1092_s21 = sshll.u32 %s1476_s13, 3 }
   0xf   : > { %s161_s24 = scalar_lea.vmem %s1471_s0, %s1092_s21 }
  0x10   : > { %v166_v25 = vld [vmem:[%s161_s24] sm:$0xff] }
  0x11   : > { %1205 = vmatpush1.bf16.msra.mxu0 %v1204_v20 }
  0x12   : > { %1207 = vmatprep.subr.bf16.mxu0 %v1206_v21 }
  0x15   : > { %1209 = vmatpush1.bf16.msra.mxu0 %v1208_v24 }
  0x18   : > { %1094 = vmatmul.mubr.msk.f32.vlgmr.msra.gmra.mrb[0].mxu0 %vm183_vm0, %v166_v25 }
  0x19   : > { %1191 = vmatprep.mubr.msk.f32.mxu0 %vm1266_vm1, %v1265_v7 }
  0xeb   : > { %v253_v26 = vpop.f32.mrb[0].mxu0 }
  0xec   : > { %432 = vrot.lane.b32.xlu1 %v253_v26, %s1267_s25  ;;  %265 = vrot.lane.b32.xlu0 %v253_v26, %s1268_s26  ;;  %v1372_v27 = vpop.f32.mrb[1].mxu0 }
  0xf0   : > { %430 = vrot.lane.b32.xlu1 %v253_v26, %s1269_s27 }
 0x15e   : > { %v266_v28 = vpop.permute.xlu0 %265  ;;  %v433_v42 = vpop.permute.xlu1 %432 }
 0x15f   : > { %1136 = vmatpush3.xpose.msk.msra.mxu1 %vm267_vm2, %v266_v28 }
 0x160   : > { %1140 = vmatprep.subr.mxu1 %v1265_v7 }
 0x162   : > { %1138 = vmatmul.mubr.msk.f32.vlgmr.msra.gmra.mrb[0].mxu1 %vm267_vm2, %v253_v26  ;;  %v431_v44 = vpop.permute.xlu1 %430 }
 0x163   : > { %1141 = vmatpush3.msra.mxu1 %v1372_v27  ;;  %1142 = vmatprep.mubr.msk.f32.mxu1 %vm1266_vm1, %v1265_v7 }
 0x164   : > { %1145 = vmatprep.subr.mxu1 %v1265_v7 }
 0x235   : > { %v338_v32 = vpop.f32.mrb[0].mxu1 }
 0x236   : > { %v342_v35 = vmul.f32 0.35355338, %v338_v32  ;;  %v1139_v36 = vpop.f32.mrb[1].mxu1 }
 0x237   : > { %v953_v36 = vld [vmem:[%s1473_s2 + $0x10] sm:$0xff] }
 0x238   : > { %v343_v37 = vadd.f32 %v342_v35, %v1381_v34  ;;  %v952_v35 = vld [vmem:[%s1473_s2 + $0x8] sm:$0xff] }
 0x23a   : > { %v345_v38 = vsel %vm344_vm4, %v343_v37, -inf }
 0x23b   : > { %346 = vmax.xlane.f32.xlu0 %v345_v38 }
 0x251   : > { %520 = vrot.lane.b32.xlu0 %v1372_v27, %s1269_s27  ;;  %s165_s27 = scalar_lea.vmem %s1474_s3, %s1092_s21 }
 0x255   : > { %604 = vrot.lane.b32.xlu0 %v253_v26, %s1271_s28 }
 0x2c8   : > { %v347_v39 = vpop.xlane.xlu0 %346 }
 0x2c9   : > { %v348_v40 = vsub.f32 %v343_v37, %v347_v39  ;;  %v1275_v37 = vmov 0.0|0.0   ;;  %v954_v39 = vld [vmem:[%s1473_s2 + $0x18] sm:$0xff] }
 0x2ca   : > { %1210 = vmatprep.subr.bf16.mxu0 %v1275_v37 }
 0x2cb   : > { %v349_v41 = vmul.f32 1.442695, %v348_v40  ;;  %v1214_v40 = vpack.c.bf16 %v954_v39, %v953_v36 }
 0x2cc   : > { %v521_v45 = vpop.permute.xlu0 %520 }
 0x2cd   : > { %1241 = vpow2.f32 %v349_v41 }
 0x2d0   : > { %v605_v58 = vpop.permute.xlu0 %604 }
 0x2d7   : > { %v1386_v43 = vpop.eup %1241 }
 0x2d8   : > { %1143 = vmatmul.mubr.msk.f32.vlgmr.msra.gmra.mrb[2].mxu1 %vm344_vm4, %v1386_v43  ;;  %v351_v20 = vsel %vm344_vm4, %v1386_v43, 0.0 }
 0x2d9   : > { %1146 = vmatpush3.xpose.msk.msra.mxu1 %vm267_vm2, %v433_v42  ;;  %1147 = vmatprep.mubr.msk.f32.mxu1 %vm1266_vm1, %v1265_v7 }
 0x2da   : > { %1150 = vmatprep.subr.mxu1 %v1265_v7 }
 0x2dc   : > { %1148 = vmatmul.mubr.msk.f32.vlgmr.msra.gmra.mrb[4].mxu1 %vm267_vm2, %v431_v44  ;;  %v955_v44 = vld [vmem:[%s1473_s2 + $0x20] sm:$0xff] }
 0x2dd   : > { %1151 = vmatpush3.msra.mxu1 %v521_v45  ;;  %1152 = vmatprep.mubr.msk.f32.mxu1 %vm1266_vm1, %v1265_v7  ;;  %v956_v45 = vld [vmem:[%s1473_s2 + $0x28] sm:$0xff] }
 0x2de   : > { %1155 = vmatprep.subr.mxu1 %v1265_v7 }
 0x3ab   : > { %v1398_v46 = vpop.f32.mrb[2].mxu1 }
 0x3ac   : > { %v1144_v47 = vpop.f32.mrb[3].mxu1 }
 0x3ad   : > { %v957_v47 = vld [vmem:[%s1473_s2 + $0x30] sm:$0xff] }
 0x3af   : > { %v504_v48 = vpop.f32.mrb[4].mxu1 }
 0x3b0   : > { %v508_v49 = vmul.f32 0.35355338, %v504_v48  ;;  %v1149_v50 = vpop.f32.mrb[5].mxu1  ;;  %v958_v48 = vld [vmem:[%s1473_s2 + $0x38] sm:$0xff] }
 0x3b2   : > { %v509_v51 = vadd.f32 %v508_v49, %v1381_v34  ;;  %v1220_v49 = vpack.c.bf16 %v958_v48, %v957_v47 }
 0x3b4   : > { %v510_v52 = vsel %vm344_vm4, %v509_v51, -inf }
 0x3b5   : > { %511 = vmax.xlane.f32.xlu1 %v510_v52 }
 0x3c6   : > { %606 = vrot.lane.b32.xlu1 %v253_v26, %s1272_s29 }
 0x3ca   : > { %693 = vrot.lane.b32.xlu1 %v1372_v27, %s1271_s28 }
 0x3ce   : > { %779 = vrot.lane.b32.xlu1 %v253_v26, %s1273_s30 }
 0x3d2   : > { %777 = vrot.lane.b32.xlu1 %v253_v26, %s1274_s4 }
 0x442   : > { %v512_v53 = vpop.xlane.xlu1 %511 }
 0x443   : > { %v513_v54 = vsub.f32 %v509_v51, %v512_v53 }
 0x445   : > { %v514_v55 = vmul.f32 1.442695, %v513_v54 }
 0x446   : > { %v607_v56 = vpop.permute.xlu1 %606 }
 0x447   : > { %1243 = vpow2.f32 %v514_v55 }
 0x44a   : > { %v694_v59 = vpop.permute.xlu1 %693 }
 0x44e   : > { %v780_v6 = vpop.permute.xlu1 %779 }
 0x451   : > { %v1244_v57 = vpop.eup %1243 }
 0x452   : > { %1153 = vmatmul.mubr.msk.f32.vlgmr.msra.gmra.mrb[6].mxu1 %vm344_vm4, %v1244_v57  ;;  %v778_v9 = vpop.permute.xlu1 %777  ;;  %v516_v18 = vsel %vm344_vm4, %v1244_v57, 0.0 }
 0x453   : > { %1156 = vmatpush3.xpose.msk.msra.mxu1 %vm267_vm2, %v607_v56  ;;  %1157 = vmatprep.mubr.msk.f32.mxu1 %vm1266_vm1, %v1265_v7 }
 0x454   : > { %1160 = vmatprep.subr.mxu1 %v1265_v7 }
 0x456   : > { %1158 = vmatmul.mubr.msk.f32.vlgmr.msra.gmra.mrb[8].mxu1 %vm267_vm2, %v605_v58 }
 0x457   : > { %1161 = vmatpush3.msra.mxu1 %v694_v59  ;;  %1162 = vmatprep.mubr.msk.f32.mxu1 %vm1266_vm1, %v1265_v7 }
 0x458   : > { %1165 = vmatprep.subr.mxu1 %v1265_v7 }
 0x525   : > { %v592_v60 = vpop.f32.mrb[6].mxu1 }
 0x526   : > { %v1154_v61 = vpop.f32.mrb[7].mxu1 }
 0x529   : > { %v678_v62 = vpop.f32.mrb[8].mxu1 }
 0x52a   : > { %v682_v63 = vmul.f32 0.35355338, %v678_v62  ;;  %v1159_v0 = vpop.f32.mrb[9].mxu1 }
 0x52c   : > { %v683_v1 = vadd.f32 %v682_v63, %v1381_v34 }
 0x52e   : > { %v684_v2 = vsel %vm344_vm4, %v683_v1, -inf }
 0x52f   : > { %685 = vmax.xlane.f32.xlu0 %v684_v2 }
 0x545   : > { %866 = vrot.lane.b32.xlu0 %v1372_v27, %s1274_s4 }
 0x5bc   : > { %v686_v3 = vpop.xlane.xlu0 %685 }
 0x5bd   : > { %v687_v4 = vsub.f32 %v683_v1, %v686_v3 }
 0x5bf   : > { %v688_v5 = vmul.f32 1.442695, %v687_v4 }
 0x5c0   : > { %v867_v10 = vpop.permute.xlu0 %866 }
 0x5c1   : > { %1245 = vpow2.f32 %v688_v5 }
 0x5cb   : > { %v1246_v8 = vpop.eup %1245 }
 0x5cc   : > { %1163 = vmatmul.mubr.msk.f32.vlgmr.msra.gmra.mrb[10].mxu1 %vm344_vm4, %v1246_v8  ;;  %v690_v19 = vsel %vm344_vm4, %v1246_v8, 0.0 }
 0x5cd   : > { %1166 = vmatpush3.xpose.msk.msra.mxu1 %vm267_vm2, %v780_v6  ;;  %1167 = vmatprep.mubr.msk.f32.mxu1 %vm1266_vm1, %v1265_v7 }
 0x5ce   : > { %1170 = vmatprep.subr.mxu1 %v1265_v7 }
 0x5d0   : > { %1168 = vmatmul.mubr.msk.f32.vlgmr.msra.gmra.mrb[12].mxu1 %vm267_vm2, %v778_v9 }
 0x5d1   : > { %1171 = vmatpush3.msra.mxu1 %v867_v10  ;;  %1172 = vmatprep.mubr.msk.f32.mxu1 %vm1266_vm1, %v1265_v7 }
 0x69f   : > { %v765_v11 = vpop.f32.mrb[10].mxu1 }
 0x6a0   : > { %v1164_v12 = vpop.f32.mrb[11].mxu1 }
 0x6a3   : > { %v851_v13 = vpop.f32.mrb[12].mxu1 }
 0x6a4   : > { %v855_v14 = vmul.f32 0.35355338, %v851_v13  ;;  %v1169_v15 = vpop.f32.mrb[13].mxu1 }
 0x6a6   : > { %v856_v16 = vadd.f32 %v855_v14, %v1381_v34  ;;  %v951_v34 = vld [vmem:[%s1473_s2] sm:$0xff] }
 0x6a7   : > { %v1211_v38 = vpack.c.bf16 %v952_v35, %v951_v34 }
 0x6a8   : > { %v857_v17 = vsel %vm344_vm4, %v856_v16, -inf }
 0x6a9   : > { %858 = vmax.xlane.f32.xlu1 %v857_v17  ;;  %1212 = vmatpush3.bf16.msra.mxu0 %v1211_v38 }
 0x6aa   : > { %1213 = vmatprep.subr.bf16.mxu0 %v1275_v37 }
 0x6ad   : > { %517 = vadd.xlane.f32.xlu1 %v516_v18  ;;  %1215 = vmatpush3.bf16.msra.mxu0 %v1214_v40 }
 0x6ae   : > { %1216 = vmatprep.subr.bf16.mxu0 %v1275_v37 }
 0x6b1   : > { %691 = vadd.xlane.f32.xlu1 %v690_v19 }
 0x6b5   : > { %352 = vadd.xlane.f32.xlu1 %v351_v20 }
 0x736   : > { %v859_v7 = vpop.xlane.xlu1 %858 }
 0x737   : > { %v860_v21 = vsub.f32 %v856_v16, %v859_v7 }
 0x739   : > { %v861_v22 = vmul.f32 1.442695, %v860_v21 }
 0x73a   : > { %v518_v23 = vpop.xlane.xlu1 %517 }
 0x73b   : > { %1247 = vpow2.f32 %v861_v22 }
 0x73c   : > { %1249 = vrcp.f32 %v518_v23 }
 0x73e   : > { %v692_v24 = vpop.xlane.xlu1 %691 }
 0x73f   : > { %1251 = vrcp.f32 %v692_v24 }
 0x742   : > { %v353_v25 = vpop.xlane.xlu1 %352 }
 0x743   : > { %1253 = vrcp.f32 %v353_v25 }
 0x745   : > { %v1248_v26 = vpop.eup %1247 }
 0x746   : > { %v1250_v27 = vpop.eup %1249  ;;  %1173 = vmatmul.mubr.msk.f32.vlgmr.msra.gmra.mrb[14].mxu1 %vm344_vm4, %v1248_v26  ;;  %v863_v28 = vsel %vm344_vm4, %v1248_v26, 0.0 }
 0x747   : > { %864 = vadd.xlane.f32.xlu0 %v863_v28  ;;  %v597_v29 = vmul.f32 %v1250_v27, %v592_v60 }
 0x749   : > { %v1252_v30 = vpop.eup %1251  ;;  %599 = vrot.lane.b32.xlu1 %v597_v29, %s1273_s30 }
 0x74a   : > { %v770_v31 = vmul.f32 %v1252_v30, %v765_v11 }
 0x74d   : > { %v1254_v32 = vpop.eup %1253  ;;  %772 = vrot.lane.b32.xlu1 %v770_v31, %s1272_s29 }
 0x74e   : > { %v428_v33 = vmul.f32 %v1254_v32, %v1398_v46  ;;  %v1217_v46 = vpack.c.bf16 %v956_v45, %v955_v44 }
 0x750   : > { %429 = vst.msk [vmem:[#allocation2] sm:$0xff] %vm267_vm2, %v428_v33  ;;  %1218 = vmatpush3.bf16.msra.mxu0 %v1217_v46 }
 0x751   : > { %1219 = vmatprep.subr.bf16.mxu0 %v1275_v37 }
 0x754   : > { %1221 = vmatpush3.bf16.msra.mxu0 %v1220_v49 }
 0x7bb   : > { %v600_v41 = vpop.permute.xlu1 %599 }
 0x7bc   : > { %603 = vst.msk [vmem:[#allocation2] sm:$0xff] %vm602_vm5, %v600_v41 }
 0x7bf   : > { %v773_v42 = vpop.permute.xlu1 %772 }
 0x7c0   : > { %776 = vst.msk [vmem:[#allocation2] sm:$0xff] %vm775_vm6, %v773_v42 }
 0x7d4   : > { %v865_v43 = vpop.xlane.xlu0 %864 }
 0x7d5   : > { %1255 = vrcp.f32 %v865_v43 }
 0x7df   : > { %v1256_v50 = vpop.eup %1255 }
 0x819   : > { %v938_v51 = vpop.f32.mrb[14].mxu1 }
 0x81a   : > { %v943_v52 = vmul.f32 %v1256_v50, %v938_v51  ;;  %v1174_v53 = vpop.f32.mrb[15].mxu1 }
 0x81c   : > { %945 = vrot.lane.b32.xlu1 %v943_v52, %s1267_s25 }
 0x88e   : > { %v946_v54 = vpop.permute.xlu1 %945 }
 0x88f   : > { %949 = vst.msk [vmem:[#allocation2] sm:$0xff] %vm948_vm7, %v946_v54 }
 0x896   : > { %v950_v55 = vld [vmem:[#allocation2] sm:$0xff] }
 0x897   : > { %1192 = vmatmul.mubr.msk.f32.vlgmr.msra.gmra.mrb[2].mxu0 %vm183_vm0, %v950_v55 }
 0x96a   : > { %v1028_v56 = vpop.f32.mrb[2].mxu0 }
 0x96b   : > { %1033 = vst.msk [vmem:[%s165_s27] sm:$0xff] %vm1032_vm8, %v1028_v56  ;;  %v1193_v57 = vpop.f32.mrb[3].mxu0 }
 0x96c PF: > { %s13_s12 = sadd.s32 1, %s1263_s12  }
 0x96d   : > { %p10_p4 = scmp.ge.s32.totalorder %s13_s12, 4  }
 0x96f   :  { %12 = sbr.rel (!%p10_p4) target bundleno = 1 (0x1), region = 62 }

</bundles_post_ra>
